<compile_context>
chip_gen: v7x
topology: tpu7x:2x2x1
jax: 0.10.0
libtpu: 0.0.40
codegen_flags: <defaults>
</compile_context>

<pallas_src>
import jax
import jax.numpy as jnp
from jax.experimental import pallas as pl
from jax.experimental.pallas import tpu as pltpu


def _gcn_kernel(text_ref, adj_ref, w_ref, b_ref, o_ref):
    """One batch block (Bb elements) per grid step.

    text_ref: (Bb*N, Fin)   adj_ref: (Bb, N, N)
    w_ref:    (Fin, Fout)   b_ref:   (1, Fout)    o_ref: (Bb, N, Fout)
    """
    bb, n, _ = adj_ref.shape
    fout = w_ref.shape[1]

    # Projection as ONE MXU matmul over the whole batch block:
    # (Bb*N, Fin) @ (Fin, Fout). Only the freshly produced VMEM value is
    # reshaped (cheap: N is tile-aligned here), not the input ref.
    hidden = jnp.dot(text_ref[...], w_ref[...],
                     preferred_element_type=jnp.float32)     # (Bb*N, Fout)
    hidden = hidden.reshape(bb, n, fout)                      # (Bb, N, Fout)
    # NOTE: bf16 MXU operands would break the 1e-4 tolerance; kept f32.

    adj = adj_ref[...]                                        # (Bb, N, N)
    denom = jnp.sum(adj, axis=2, keepdims=True) + 1.0         # (Bb, N, 1)
    # EUP approximate reciprocal + one Newton-Raphson step:
    # rel. error ~ (2^-12)^2 ≈ 6e-8, well inside the 1e-4 tolerance.
    inv = pl.reciprocal(denom, approx=True)
    inv = inv * (2.0 - denom * inv)

    # Batched neighborhood aggregation on the MXU, then reciprocal-multiply.
    agg = jnp.einsum("bij,bjf->bif", adj, hidden,
                     preferred_element_type=jnp.float32)      # (Bb, N, Fout)
    o_ref[...] = (agg * inv + b_ref[...]).astype(o_ref.dtype)


def _vmem_limit_bytes():
    """Generation-aware scoped-VMEM limit (v5e/v6e: 96 MiB, v7x: 48 MiB)."""
    try:
        cap = pltpu.get_tpu_info().vmem_capacity_bytes
    except Exception:
        cap = 64 * 1024 * 1024  # conservative default (v7x per-TC size)
    return min(int(cap * 3 // 4), 96 * 1024 * 1024)


def _pick_batch_block(B, N, Fin, Fout, budget_bytes, target_steps=4):
    """Largest Bb that (a) divides B exactly (=> no jnp.pad batch copy),
    (b) fits the VMEM budget counting double-buffered text/adj/out tiles,
    weight/bias buffers and the f32 hidden/agg temporaries, and
    (c) leaves >= min(B, target_steps) grid steps so pipelining and
    megacore sharding actually engage."""
    f32 = 4
    fixed = 2 * f32 * (Fin * Fout + Fout)                    # weight + bias (x2 buf)

    def fits(bb):
        tiles = 2 * f32 * bb * (N * Fin + N * N + N * Fout)  # in/out, double-buffered
        temps = 2 * f32 * bb * N * Fout                      # hidden + agg (f32)
        return fixed + tiles + temps <= budget_bytes

    divisors = [d for d in range(B, 0, -1) if B % d == 0]
    min_steps = min(B, target_steps)
    for bb in divisors:
        if B // bb >= min_steps and fits(bb):
            return bb
    for bb in divisors:                                      # fall back: drop step target
        if fits(bb):
            return bb
    return 1
    # TODO(synk): if even Bb=1 overflows VMEM (very large N, esp. v7x 64 MiB),
    # add a k-tiled 'arbitrary' reduction over adj columns with an f32
    # accumulator + partial row-sum scratch.


def graph_convolution(text, adj, weight, bias=None):
    """text: (B, N, Fin) f32, adj: (B, N, N) f32, weight: (Fin, Fout), bias: (Fout,) or None."""
    B, N, Fin = text.shape
    Fout = weight.shape[1]

    vmem_limit = _vmem_limit_bytes()
    Bb = _pick_batch_block(B, N, Fin, Fout, budget_bytes=vmem_limit)
    num_blocks = B // Bb

    w = weight.astype(jnp.float32)
    if bias is None:
        b = jnp.zeros((1, Fout), jnp.float32)
    else:
        b = bias.astype(jnp.float32).reshape(1, Fout)

    # Wrapper-side reshape: free layout plumbing in HBM (contiguous view),
    # avoids an in-kernel sublane-collapsing reshape of the input ref.
    text2d = text.astype(jnp.float32).reshape(B * N, Fin)
    adj = adj.astype(jnp.float32)

    flops = 2 * B * N * Fin * Fout + 2 * B * N * N * Fout
    bytes_accessed = 4 * (B * N * Fin + B * N * N + Fin * Fout + Fout + B * N * Fout)
    cost = pl.CostEstimate(flops=flops, transcendentals=B * N,
                           bytes_accessed=bytes_accessed)

    out = pl.pallas_call(
        _gcn_kernel,
        out_shape=jax.ShapeDtypeStruct((B, N, Fout), jnp.float32),
        grid_spec=pltpu.PrefetchScalarGridSpec(
            num_scalar_prefetch=0,
            grid=(num_blocks,),
            in_specs=[
                pl.BlockSpec((Bb * N, Fin), lambda i: (i, 0)),
                pl.BlockSpec((Bb, N, N), lambda i: (i, 0, 0)),
                pl.BlockSpec((Fin, Fout), lambda i: (0, 0)),
                pl.BlockSpec((1, Fout), lambda i: (0, 0)),
            ],
            out_specs=pl.BlockSpec((Bb, N, Fout), lambda i: (i, 0, 0)),
        ),
        compiler_params=pltpu.CompilerParams(
            dimension_semantics=("parallel",),
            vmem_limit_bytes=vmem_limit,
        ),
        cost_estimate=cost,
    )(text2d, adj, w, b)

    return out


def _reference(text, adj, weight, bias):
    hidden = jnp.matmul(text, weight)
    denom = jnp.sum(adj, axis=2, keepdims=True) + 1.0
    out = jnp.matmul(adj, hidden) / denom
    return out + bias


if __name__ == "__main__":
    B, N, Fin, Fout = 2, 16, 32, 32

    key = jax.random.PRNGKey(0)
    k_text, k_adj, k_w, k_b = jax.random.split(key, 4)

    text = jax.random.normal(k_text, (B, N, Fin), dtype=jnp.float32)
    adj = jax.random.uniform(k_adj, (B, N, N), dtype=jnp.float32)
    # Deterministic parameter init (module __init__ leaves params uninitialized).
    weight = jax.random.normal(k_w, (Fin, Fout), dtype=jnp.float32) * 0.1
    bias = jax.random.normal(k_b, (Fout,), dtype=jnp.float32) * 0.1

    out = graph_convolution(text, adj, weight, bias)
    jax.block_until_ready(out)

    ref = _reference(text, adj, weight, bias)
    assert out.shape == (B, N, Fout)
    assert jnp.allclose(out, ref, atol=1e-4, rtol=1e-4)

    print("KERNEL_OK")
</pallas_src>

<mosaic_0001>
module attributes {stable_mosaic.version = 11 : i64} {
  func.func @_gcn_kernel(%arg0: i32, %arg1: memref<16x32xf32, #tpu.memory_space<vmem>>, %arg2: memref<1x16x16xf32, #tpu.memory_space<vmem>>, %arg3: memref<32x32xf32, #tpu.memory_space<vmem>>, %arg4: memref<1x32xf32, #tpu.memory_space<vmem>>, %arg5: memref<1x16x32xf32, #tpu.memory_space<vmem>>) attributes {dimension_semantics = [#tpu.dimension_semantics<parallel>], iteration_bounds = array<i64: 2>, scalar_prefetch = 0 : i64, scratch_operands = 0 : i64, tpu.core_type = #tpu.core_type<tc>, window_params = [{transform_indices = @transform_0, window_bounds = array<i64: 16, 32>}, {transform_indices = @transform_1, window_bounds = array<i64: 1, 16, 16>}, {pipeline_mode = #tpu.pipeline_mode<synchronous>, transform_indices = @transform_2, window_bounds = array<i64: 32, 32>}, {pipeline_mode = #tpu.pipeline_mode<synchronous>, transform_indices = @transform_3, window_bounds = array<i64: 1, 32>}, {transform_indices = @transform_4, window_bounds = array<i64: 1, 16, 32>}]} {
    %c0 = arith.constant 0 : index
    %c0_0 = arith.constant 0 : index
    %0 = vector.load %arg1[%c0, %c0_0] : memref<16x32xf32, #tpu.memory_space<vmem>>, vector<16x32xf32>
    %c0_1 = arith.constant 0 : index
    %c0_2 = arith.constant 0 : index
    %1 = vector.load %arg3[%c0_1, %c0_2] : memref<32x32xf32, #tpu.memory_space<vmem>>, vector<32x32xf32>
    %cst = arith.constant dense<0.000000e+00> : vector<16x32xf32>
    %2 = tpu.matmul %0, %1, %cst {dimension_numbers = #tpu.dot_dimension_numbers<[1], [0], [0], [1], [0, 0, 1, 1], [], []>} : vector<16x32xf32>, vector<32x32xf32>, vector<16x32xf32> -> vector<16x32xf32>
    %3 = vector.shape_cast %2 : vector<16x32xf32> to vector<1x16x32xf32>
    %c0_3 = arith.constant 0 : index
    %c0_4 = arith.constant 0 : index
    %c0_5 = arith.constant 0 : index
    %4 = vector.load %arg2[%c0_3, %c0_4, %c0_5] : memref<1x16x16xf32, #tpu.memory_space<vmem>>, vector<1x16x16xf32>
    %cst_6 = arith.constant dense<0.000000e+00> : vector<1x16xf32>
    %5 = vector.multi_reduction <add>, %4, %cst_6 [2] : vector<1x16x16xf32> to vector<1x16xf32>
    %6 = vector.shape_cast %5 : vector<1x16xf32> to vector<1x16x1xf32>
    %cst_7 = arith.constant 1.000000e+00 : f32
    %7 = vector.broadcast %cst_7 : f32 to vector<1x16x1xf32>
    %8 = arith.addf %6, %7 : vector<1x16x1xf32>
    %9 = tpu.reciprocal %8 {approx = true} : vector<1x16x1xf32> -> vector<1x16x1xf32>
    %10 = arith.mulf %8, %9 : vector<1x16x1xf32>
    %cst_8 = arith.constant 2.000000e+00 : f32
    %11 = vector.broadcast %cst_8 : f32 to vector<1x16x1xf32>
    %12 = arith.subf %11, %10 : vector<1x16x1xf32>
    %13 = arith.mulf %9, %12 : vector<1x16x1xf32>
    "tpu.trace_start"() <{level = 10 : i32, message = "bij,bjf->bif"}> : () -> ()
    %cst_9 = arith.constant dense<0.000000e+00> : vector<1x16x32xf32>
    %14 = tpu.matmul %4, %3, %cst_9 {dimension_numbers = #tpu.dot_dimension_numbers<[2], [1], [1], [2], [0, 0, 0, 1, 1, 2], [0], [0]>} : vector<1x16x16xf32>, vector<1x16x32xf32>, vector<1x16x32xf32> -> vector<1x16x32xf32>
    "tpu.trace_stop"() : () -> ()
    %15 = vector.broadcast %13 : vector<1x16x1xf32> to vector<1x16x32xf32>
    %16 = arith.mulf %14, %15 : vector<1x16x32xf32>
    %c0_10 = arith.constant 0 : index
    %c0_11 = arith.constant 0 : index
    %17 = vector.load %arg4[%c0_10, %c0_11] : memref<1x32xf32, #tpu.memory_space<vmem>>, vector<1x32xf32>
    %18 = vector.shape_cast %17 : vector<1x32xf32> to vector<1x1x32xf32>
    %19 = vector.broadcast %18 : vector<1x1x32xf32> to vector<1x16x32xf32>
    %20 = arith.addf %16, %19 : vector<1x16x32xf32>
    %c0_12 = arith.constant 0 : index
    %c0_13 = arith.constant 0 : index
    %c0_14 = arith.constant 0 : index
    %21 = vector.load %arg5[%c0_12, %c0_13, %c0_14] : memref<1x16x32xf32, #tpu.memory_space<vmem>>, vector<1x16x32xf32>
    tpu.vector_store %arg5[%c0_12, %c0_13, %c0_14], %20 {strides = array<i32>} : memref<1x16x32xf32, #tpu.memory_space<vmem>>, vector<1x16x32xf32>,
    return
  }
  func.func @transform_0(%arg0: i32) -> (i32, i32) {
    %c0_i32 = arith.constant 0 : i32
    %c0_i32_0 = arith.constant 0 : i32
    return %arg0, %c0_i32 : i32, i32
  }
  func.func @transform_1(%arg0: i32) -> (i32, i32, i32) {
    %c0_i32 = arith.constant 0 : i32
    %c0_i32_0 = arith.constant 0 : i32
    %c0_i32_1 = arith.constant 0 : i32
    return %arg0, %c0_i32, %c0_i32_0 : i32, i32, i32
  }
  func.func @transform_2(%arg0: i32) -> (i32, i32) {
    %c0_i32 = arith.constant 0 : i32
    %c0_i32_0 = arith.constant 0 : i32
    %c0_i32_1 = arith.constant 0 : i32
    return %c0_i32, %c0_i32_0 : i32, i32
  }
  func.func @transform_3(%arg0: i32) -> (i32, i32) {
    %c0_i32 = arith.constant 0 : i32
    %c0_i32_0 = arith.constant 0 : i32
    %c0_i32_1 = arith.constant 0 : i32
    return %c0_i32, %c0_i32_0 : i32, i32
  }
  func.func @transform_4(%arg0: i32) -> (i32, i32, i32) {
    %c0_i32 = arith.constant 0 : i32
    %c0_i32_0 = arith.constant 0 : i32
    %c0_i32_1 = arith.constant 0 : i32
    return %arg0, %c0_i32, %c0_i32_0 : i32, i32, i32
  }
}

</mosaic_0001>

<bundles_post_ra>
// kernel: tpu_custom_call.1
= control target key start
LH: loop header
LB: loop body
LE: loop exit
PB: predicated region body
PF: predicated region fallthrough
CT: control target
= control target key end

     0   :  { %s1191_s0 = inlined_call_operand.hbm [shape: f32[32,32], index: 0, kind: input, shape index: {}]   ;;  %s1192_s1 = inlined_call_operand.hbm [shape: f32[2,16,16], index: 1, kind: input, shape index: {}]   ;;  %s1193_s2 = inlined_call_operand.hbm [shape: f32[32,32], index: 2, kind: input, shape index: {}]   ;;  %s1194_s3 = inlined_call_operand.vmem [shape: f32[1,32], index: 3, kind: input, shape index: {}]   ;;  %s1195_s4 = inlined_call_operand.hbm [shape: f32[2,16,32], index: 4, kind: output, shape index: {}]  }
   0x1   :  { %1203 = sst [smem:[#allocation14_spill]] %s1191_s0 }
   0x2   :  { %1204 = sst [smem:[#allocation15_spill]] %s1193_s2 }
   0x3   :  { %9 = vsyncpa [#allocation3], 0 }
   0x4   :  { %11 = vsyncpa [#allocation3 + $0x1], 0 }
   0x5   :  { %12 = vsyncpa [#allocation6], 0 }
   0x6   :  { %14 = vsyncpa [#allocation6 + $0x1], 0 }
   0x7   :  { %15 = vsyncpa [#allocation4], 0 }
   0x8   :  { %17 = vsyncpa [#allocation4 + $0x1], 0  ;;  %s926_s15 = smov 0   ;;  %s928_s16 = smov 0  }
   0x9   :  { %s930_s17 = smov 0   ;;  %s932_s18 = smov 0  }
   0xa LB: > { %s947_s19 = sadd.s32 4294967295, %s891_s18   ;;  %s591_s20 = sadd.s32 4294967294, %s891_s18   ;;  %s891_s18 = sphi %s932_s18, %s1227_s18   ;;  %s887_s17 = sphi %s930_s17, %s1226_s17   ;;  %s883_s16 = sphi %s928_s16, %s1225_s16   ;;  %s879_s15 = sphi %s926_s15, %s1224_s15  }
   0xb   : > { %p43_p0 = scmp.ne.s32.totalorder %s883_s16, %s879_s15  ;;  %p1196_p1 = scmp.eq.s32.totalorder %s947_s19, 0 }
   0xc   : > { %p141_p3 = scmp.eq.s32.totalorder %s591_s20, 1  ;;  %p592_p5 = scmp.ge.s32.totalorder %s891_s18, 1 }
   0xd   : > { %p956_p4 = por %p1196_p1, %p43_p0  ;;  %p148_p7 = scmp.lt.s32.totalorder %s891_s18, 3 }
   0xe   : > { %p961_p6 = por %p141_p3, %p43_p0  ;;  %s893_s24 = smov [#allocation7]  }
   0xf   : > { %s1205_s21 = scalar_select %p956_p4, 1, 0 }
  0x10   : > { %s1206_s22 = scalar_select %p961_p6, 1, 0 }
  0x11   : > { %p966_p8 = pnand %p592_p5, %p148_p7  ;;  %s160_s25 = sshll.u32 %s893_s24, 4  ;;  %s970_s25 = int_to_ptr.vmem [resolvable:$true] %s160_s25 }
  0x12   : > { %s982_s27 = sadd.s32 1, %s891_s18   ;;  %s30_s28 = sadd.s32 1, %s887_s17 }
  0x13   : > { %s1207_s23 = scalar_select %p966_p8, 1, 0 }
  0x14   : > { %p669_p9 = pneg %p966_p8  ;;  %s27_s29 = ssub.s32 %s891_s18, %s982_s27 }
  0x15   : > { %s1209_s2 = sld [smem:[#allocation15_spill]] }
  0x16   : > { %p977_p11 = pnand %p669_p9, %p1196_p1 }
  0x18   : > { %p731_p13 = pneg %p977_p11 }
  0x1b   : > { %s729_s6 = scalar_lea.hbm %s1209_s2, 512 }
  0x1c   : > { %p730_p12 = scmp.ne.s32.totalorder %s1209_s2, %s729_s6  ;;  %p736_p5 = scmp.lt.u32.totalorder %s729_s6, %s1209_s2 }
  0x1e   : > { %p732_p0 = pnand %p731_p13, %p730_p12 }
  0x20   : > { %p733_p3 = pneg %p732_p0 }
  0x22   : > { %p738_p7 = pnand %p736_p5, %p733_p3 }
  0x24   : > { %741 = shalt.err (!%p738_p7)
}
  0x25   : > { %s742_s11 = scalar_lea.vmem %s970_s25, 512  ;;  %p750_p2 = scmp.lt.s32.totalorder %s970_s25, %s970_s25 }
  0x26   : > { %p743_p9 = scmp.ne.s32.totalorder %s970_s25, %s742_s11  ;;  %p751_p6 = scmp.lt.s32.totalorder %s742_s11, %s742_s11 }
  0x28   : > { %p745_p10 = pnand %p743_p9, %p731_p13  ;;  %p752_p4 = por %p751_p6, %p750_p2 }
  0x2a   : > { %p746_p1 = pneg %p745_p10 }
  0x2c   : > { %p753_p8 = pnand %p752_p4, %p746_p1 }
  0x2e   : > { %756 = shalt.err (!%p753_p8)
}
  0x2f   : > { %s1199_s12 = smov 128   ;;  %s1201_s13 = smov 8  }
  0x30   : > { %672 = dma.hbm_to_vmem [thread:$0]  (!%p977_p11), %s1209_s2, 512, %s970_s25, [#allocation6], %s1199_s12, %s1199_s12, %s1201_s13  }
  0x31   : > { %p28_p1 = scmp.eq.s32.totalorder %s27_s29, 0  ;;  %p37_p2 = scmp.ne.s32.totalorder %s887_s17, %s883_s16 }
  0x32   : > { %p38_p4 = scmp.eq.s32.totalorder %s891_s18, 0  ;;  %p685_p6 = scmp.lt.s32.totalorder %s891_s18, 2 }
  0x33   : > { %s1016_s24 = scalar_select %p28_p1, %s887_s17, %s30_s28  }
  0x34   : > { %p39_p8 = por %p38_p4, %p37_p2  ;;  %p1211_p10 = scmp.eq.s32.totalorder %s947_s19, 1 }
  0x35   : > { %1210 = sst [smem:[#allocation13_spill]] %s1016_s24  ;;  %s177_s26 = sand.u32 1, %s887_s17  }
  0x36   : > { %p1020_p12 = por %p1211_p10, %p37_p2  ;;  %s616_s5 = sshll.u32 %s891_s18, 8 }
  0x37   : > { %s1026_s6 = sshll.u32 %s177_s26, 4  ;;  %s1213_s0 = sld [smem:[#allocation14_spill]] }
  0x38   : > { %s181_s28 = scalar_lea.vmem [#allocation2], %s1026_s6  ;;  %p1034_p11 = pnand %p685_p6, %p39_p8 }
  0x39   : > { %s188_s29 = sshll.u32 %s181_s28, 4  ;;  %s1043_s14 = scalar_lea.hbm %s1192_s1, %s616_s5  ;;  %s1038_s29 = int_to_ptr.vmem [resolvable:$true] %s188_s29 }
  0x3a   : > { %s1045_s20 = scalar_lea.sflag [#allocation3], %s177_s26  ;;  %p759_p0 = pneg %p1034_p11 }
  0x3d   : > { %s1031_s25 = scalar_lea.hbm %s1213_s0, %s616_s5  ;;  %s762_s12 = scalar_lea.hbm %s1213_s0, 512 }
  0x3e   : > { %s757_s7 = scalar_lea.hbm %s1031_s25, 256  ;;  %p763_p7 = scmp.lt.u32.totalorder %s1031_s25, %s1213_s0 }
  0x3f   : > { %p758_p13 = scmp.ne.s32.totalorder %s1031_s25, %s757_s7  ;;  %p764_p9 = scmp.lt.u32.totalorder %s762_s12, %s757_s7 }
  0x40   : > { %p766_p2 = scmp.lt.u32.totalorder %s757_s7, %s1031_s25 }
  0x41   : > { %p760_p3 = pnand %p759_p0, %p758_p13  ;;  %p765_p1 = por %p764_p9, %p763_p7 }
  0x43   : > { %p761_p5 = pneg %p760_p3  ;;  %p767_p4 = por %p766_p2, %p765_p1 }
  0x45   : > { %p768_p6 = pnand %p767_p4, %p761_p5 }
  0x47   : > { %771 = shalt.err (!%p768_p6)
}
  0x48   : > { %s772_s26 = scalar_lea.vmem %s1038_s29, 256  ;;  %s896_s5 = smov [#allocation2]  }
  0x49   : > { %p773_p8 = scmp.ne.s32.totalorder %s1038_s29, %s772_s26  ;;  %s777_s10 = sshll.u32 %s896_s5, 4  ;;  %s778_s10 = int_to_ptr.vmem [resolvable:$false] %s777_s10 }
  0x4a   : > { %s779_s2 = scalar_lea.vmem %s778_s10, 512  ;;  %p780_p3 = scmp.lt.s32.totalorder %s1038_s29, %s778_s10 }
  0x4b   : > { %p775_p10 = pnand %p773_p8, %p759_p0  ;;  %p781_p7 = scmp.lt.s32.totalorder %s779_s2, %s772_s26 }
  0x4d   : > { %p776_p13 = pneg %p775_p10  ;;  %p782_p9 = por %p781_p7, %p780_p3 }
  0x4f   : > { %p783_p1 = pnand %p782_p9, %p776_p13 }
  0x51   : > { %786 = shalt.err (!%p783_p1)
}
  0x52   : > { %s1215_s12 = smov 8   ;;  %s1216_s13 = smov 128  }
  0x53   : > { %676 = dma.hbm_to_vmem [thread:$0]  (!%p1034_p11), %s1031_s25, 256, %s1038_s29, %s1045_s20, %s1216_s13, %s1216_s13, %s1215_s12  }
  0x54   : > { %s202_s11 = scalar_lea.vmem [#allocation5], %s1026_s6  ;;  %s198_s8 = sand.u32 1, %s891_s18  }
  0x55   : > { %s209_s7 = sshll.u32 %s202_s11, 4  ;;  %s1080_s28 = scalar_lea.sflag [#allocation6], %s198_s8  ;;  %s1078_s7 = int_to_ptr.vmem [resolvable:$true] %s209_s7 }
  0x56   : > { %s787_s26 = scalar_lea.hbm %s1043_s14, 256  ;;  %s792_s2 = scalar_lea.hbm %s1192_s1, 512 }
  0x57   : > { %p788_p5 = scmp.ne.s32.totalorder %s1043_s14, %s787_s26  ;;  %p793_p6 = scmp.lt.u32.totalorder %s1043_s14, %s1192_s1 }
  0x58   : > { %p794_p8 = scmp.lt.u32.totalorder %s792_s2, %s787_s26  ;;  %p796_p13 = scmp.lt.u32.totalorder %s787_s26, %s1043_s14 }
  0x59   : > { %p790_p2 = pnand %p788_p5, %p759_p0 }
  0x5a   : > { %p795_p10 = por %p794_p8, %p793_p6 }
  0x5b   : > { %p791_p4 = pneg %p790_p2 }
  0x5c   : > { %p797_p3 = por %p796_p13, %p795_p10 }
  0x5e   : > { %p798_p7 = pnand %p797_p3, %p791_p4 }
  0x60   : > { %801 = shalt.err (!%p798_p7)
}
  0x61   : > { %s802_s6 = scalar_lea.vmem %s1078_s7, 256  ;;  %s897_s25 = smov [#allocation5]  }
  0x62   : > { %p803_p9 = scmp.ne.s32.totalorder %s1078_s7, %s802_s6  ;;  %s807_s29 = sshll.u32 %s897_s25, 4  ;;  %s808_s29 = int_to_ptr.vmem [resolvable:$false] %s807_s29 }
  0x63   : > { %s809_s0 = scalar_lea.vmem %s808_s29, 512  ;;  %p810_p2 = scmp.lt.s32.totalorder %s1078_s7, %s808_s29 }
  0x64   : > { %p805_p1 = pnand %p803_p9, %p759_p0  ;;  %p811_p6 = scmp.lt.s32.totalorder %s809_s0, %s802_s6 }
  0x66   : > { %p806_p5 = pneg %p805_p1  ;;  %p812_p8 = por %p811_p6, %p810_p2 }
  0x68   : > { %p813_p10 = pnand %p812_p8, %p806_p5 }
  0x6a   : > { %816 = shalt.err (!%p813_p10)
}
  0x6b   : > { %679 = dma.hbm_to_vmem [thread:$0]  (!%p1034_p11), %s1043_s14, 256, %s1078_s7, %s1080_s28, %s1216_s13, %s1216_s13, %s1215_s12  }
  0x6c   : > { %p1217_p0 = scmp.ne.s32.totalorder %s1207_s23, 0 }
  0x6d   : > { %s1112_s24 = sand.u32 (!%p1217_p0), 1, %s883_s16   ;;  %p1218_p4 = scmp.ne.s32.totalorder (!%p1217_p0), %s1205_s21, 0 }
  0x6e   : > { %221 = sbr.rel (%p1217_p0) target bundleno = 586 (0x24a), region = 36  ;;  %s1115_s20 = sshll.u32 (!%p1217_p0), %s1112_s24, 4 }
  0x6f   : > { %s224_s9 = scalar_lea.sflag (!%p1217_p0), [#allocation3], %s1112_s24  ;;  %s227_s11 = scalar_lea.vmem (!%p1217_p0), [#allocation2], %s1115_s20 }
  0x75   : > { %862 = dma.done.wait (%p1218_p4), %s224_s9, 256  }
  0x76   : > { %864 = vsyncadd (%p1218_p4), %s224_s9, 4294967040  ;;  %s232_s23 = sand.u32 1, %s947_s19   ;;  %s236_s12 = scalar_lea.vmem [#allocation5], %s1115_s20 }
  0x77   : > { %s233_s14 = scalar_lea.sflag [#allocation6], %s232_s23 }
  0x78   : > { %866 = dma.done.wait (%p1218_p4), %s233_s14, 256  }
  0x79   : > { %868 = vsyncadd (%p1218_p4), %s233_s14, 4294967040  ;;  %p1219_p11 = scmp.eq.s32.totalorder %s947_s19, 0 }
  0x7b   : > { %870 = dma.done.wait (%p1219_p11), [#allocation6], 512   ;;  %p1220_p13 = pmov %p1219_p11 }
  0x7c   : > { %vm277_vm0 = vcmask 261120   ;;  %v273_v0 = vld [vmem:[#allocation7] sm:$0xff]  ;;  %v274_v1 = vld [vmem:[#allocation7 + $0x8] sm:$0xff]  ;;  %v275_v2 = vld [vmem:[#allocation7 + $0x10] sm:$0xff]  ;;  %vm361_vm1 = vcmask 130048   ;;  %s618_s7 = sshll.u32 %s947_s19, 8 }
  0x7d   : > { %872 = vsyncadd (%p1220_p13), [#allocation6], 4294966784  ;;  %v647_v3 = vpack.c.bf16 %v274_v1, %v273_v0  ;;  %v276_v4 = vld [vmem:[#allocation7 + $0x18] sm:$0xff]  ;;  %v271_v5 = vld [vmem:[%s227_s11] sm:$0xff]  ;;  %s269_s8 = scalar_lea.vmem [#allocation8], %s1115_s20  ;;  %s1143_s10 = scalar_lea.hbm %s1195_s4, %s618_s7 }
  0x7e   : > { %v651_v6 = vpack.c.bf16 %v276_v4, %v275_v2  ;;  %637 = vmatprep.mubr.msk.f32.mxu0 %vm277_vm0, %v271_v5  ;;  %v272_v7 = vld [vmem:[%s227_s11 + $0x8] sm:$0xff]  ;;  %v359_v8 = vld [vmem:[%s236_s12] sm:$0xff]  ;;  %s486_s28 = sshll.u32 %s269_s8, 4  ;;  %s473_s19 = scalar_lea.sflag [#allocation4], %s1112_s24  ;;  %s1145_s28 = int_to_ptr.vmem [resolvable:$true] %s486_s28 }
  0x7f   : > { %648 = vmatprep.subr.bf16.mxu0 %v647_v3  ;;  %644 = vmatprep.mubr.msk.f32.mxu1 %vm361_vm1, %v359_v8  ;;  %v362_v9 = vsel %vm361_vm1, %v359_v8, 0.0  ;;  %v360_v10 = vld [vmem:[%s236_s12 + $0x8] sm:$0xff]  ;;  %v610_v27 = vld [vmem:[%s1194_s3] ss:$0 sm:$0xff]  ;;  %s817_s2 = scalar_lea.vmem %s1145_s28, 256  ;;  %s898_s6 = smov [#allocation8]  }
  0x80   : > { %650 = vmatpush3.bf16.msra.mxu0 %v647_v3  ;;  %363 = vadd.xlane.f32.xlu0 %v362_v9  ;;  %v365_v11 = vsel %vm361_vm1, %v360_v10, 0.0  ;;  %p818_p3 = scmp.ne.s32.totalorder %s1145_s28, %s817_s2  ;;  %s821_s25 = sshll.u32 %s898_s6, 4  ;;  %s822_s25 = int_to_ptr.vmem [resolvable:$false] %s821_s25 }
  0x81   : > { %652 = vmatprep.subr.bf16.mxu0 %v651_v6  ;;  %s823_s29 = scalar_lea.vmem %s822_s25, 512  ;;  %p824_p1 = scmp.lt.s32.totalorder %s1145_s28, %s822_s25 }
  0x82   : > { %p819_p7 = pnand %p818_p3, %p1020_p12  ;;  %p825_p5 = scmp.lt.s32.totalorder %s823_s29, %s817_s2 }
  0x84   : > { %654 = vmatpush3.bf16.msra.mxu0 %v651_v6  ;;  %366 = vadd.xlane.f32.xlu0 %v365_v11  ;;  %p820_p9 = pneg %p819_p7  ;;  %p826_p2 = por %p825_p5, %p824_p1 }
  0x86   : > { %p827_p6 = pnand %p826_p2, %p820_p9 }
  0x87   : > { %638 = vmatmul.mubr.msk.f32.vlgmr.msra.gmra.mrb[0].mxu0 %vm277_vm0, %v272_v7 }
 0x10d   : > { %v364_v15 = vpop.xlane.xlu0 %363 }
 0x10e   : > { %v368_v18 = vadd.f32 1.0, %v364_v15 }
 0x111   : > { %v367_v16 = vpop.xlane.xlu0 %366 }
 0x112   : > { %v369_v17 = vadd.f32 1.0, %v367_v16 }
 0x114   : > { %725 = vrcp.f32 %v369_v17 }
 0x115   : > { %727 = vrcp.f32 %v368_v18 }
 0x11e   : > { %v726_v19 = vpop.eup %725 }
 0x11f   : > { %v728_v20 = vpop.eup %727  ;;  %v373_v21 = vmul.f32 %v726_v19, %v369_v17 }
 0x120   : > { %v372_v22 = vmul.f32 %v728_v20, %v368_v18 }
 0x121   : > { %v375_v23 = vsub.f32 2.0, %v373_v21 }
 0x122   : > { %v374_v24 = vsub.f32 2.0, %v372_v22 }
 0x123   : > { %v377_v25 = vmul.f32 %v726_v19, %v375_v23 }
 0x124   : > { %v376_v28 = vmul.f32 %v728_v20, %v374_v24 }
 0x15a   : > { %v639_v12 = vpop.f32.mrb[0].mxu0 }
 0x15b   : > { %v350_v13 = vpop.f32.mrb[1].mxu0 }
 0x15c   : > { %v655_v14 = vpack.c.bf16 %v639_v12, %v350_v13 }
 0x15e   : > { %656 = vmatprep.subr.bf16.mxu1 %v655_v14 }
 0x15f   : > { %658 = vmatpush3.bf16.msra.mxu1 %v655_v14 }
 0x162   : > { %645 = vmatmul.mubr.msk.f32.vlgmr.msra.gmra.mrb[0].mxu1 %vm361_vm1, %v360_v10 }
 0x235   : > { %v646_v26 = vpop.f32.mrb[0].mxu1 }
 0x236   : > { %v460_v29 = vmul.f32 %v646_v26, %v377_v25  ;;  %v450_v30 = vpop.f32.mrb[1].mxu1 }
 0x237   : > { %v459_v31 = vmul.f32 %v450_v30, %v376_v28 }
 0x238   : > { %v469_v32 = vadd.f32 %v610_v27, %v460_v29 }
 0x239   : > { %v468_v33 = vadd.f32 %v610_v27, %v459_v31 }
 0x23a   : > { %471 = vst.msk [vmem:[%s269_s8 + $0x8] sm:$0xff] %vm277_vm0, %v469_v32 }
 0x23b   : > { %470 = vst.msk [vmem:[%s269_s8] sm:$0xff] %vm277_vm0, %v468_v33 }
 0x23c   : > { %830 = shalt.err (!%p827_p6)
}
 0x23d   : > { %s831_s0 = scalar_lea.hbm %s1143_s10, 256  ;;  %s835_s11 = scalar_lea.hbm %s1195_s4, 512 }
 0x23e   : > { %p832_p8 = scmp.ne.s32.totalorder %s1143_s10, %s831_s0  ;;  %p836_p4 = scmp.lt.u32.totalorder %s1143_s10, %s1195_s4 }
 0x23f   : > { %p837_p11 = scmp.lt.u32.totalorder %s835_s11, %s831_s0  ;;  %p839_p3 = scmp.lt.u32.totalorder %s831_s0, %s1143_s10 }
 0x240   : > { %p833_p10 = pnand %p832_p8, %p1020_p12 }
 0x241   : > { %p838_p13 = por %p837_p11, %p836_p4 }
 0x242   : > { %p834_p0 = pneg %p833_p10 }
 0x243   : > { %p840_p7 = por %p839_p3, %p838_p13 }
 0x245   : > { %p841_p9 = pnand %p840_p7, %p834_p0 }
 0x247   : > { %844 = shalt.err (!%p841_p9)
}
 0x248   : > { %s899_s12 = smov 128   ;;  %s900_s21 = smov 8  }
 0x249   : > { %667 = dma.vmem_to_hbm [thread:$0]  (%p1020_p12), %s1145_s28, 256, %s1143_s10, %s473_s19, %s899_s12, %s899_s12, %s900_s21  }
 0x24a PF: > { %s501_s13 = sand.u32 1, %s879_s15   ;;  %p1221_p1 = scmp.ne.s32.totalorder %s1206_s22, 0 }
 0x24b   : > { %p1222_p5 = scmp.ge.s32.totalorder %s891_s18, 2  ;;  %s502_s7 = scalar_lea.sflag [#allocation4], %s501_s13 }
 0x24d   : > { %p681_p2 = pnand %p1222_p5, %p1221_p1 }
 0x24f   : > { %874 = dma.done.wait (!%p681_p2), %s502_s7, 256  }
 0x250   : > { %876 = vsyncadd (!%p681_p2), %s502_s7, 4294967040  ;;  %s1223_s8 = sld [smem:[#allocation13_spill]]  ;;  %p20_p6 = scmp.ge.s32.totalorder %s982_s27, 4  }
 0x251   : > { %s1224_s15 = smov %s883_s16  ;;  %s1225_s16 = smov %s887_s17 }
 0x252   : > { %s1227_s18 = smov %s982_s27  ;;  %22 = sbr.rel (!%p20_p6) target bundleno = 10 (0xa), region = 98 }
 0x256   : > { %s1226_s17 = smov %s1223_s8 }
 0x259   :  { %507 = vsyncpa [#allocation3], 1 }
 0x25a   :  { %509 = vsyncpa [#allocation3 + $0x1], 1 }
 0x25b   :  { %510 = vsyncpa [#allocation6], 1 }
 0x25c   :  { %512 = vsyncpa [#allocation6 + $0x1], 1 }
 0x25d   :  { %513 = vsyncpa [#allocation4], 1 }
 0x25e   :  { %515 = vsyncpa [#allocation4 + $0x1], 1 }

</bundles_post_ra>
